<compile_context>
chip_gen: v6e
topology: v6e:2x2x1
jax: 0.10.0
libtpu: 0.0.40
codegen_flags: <defaults>
</compile_context>

<pallas_src>
import jax
import jax.numpy as jnp
from jax.experimental import pallas as pl
from jax.experimental.pallas import tpu as pltpu

HIDDEN = 32      # hidden_size
VOCAB = 16       # output_size
HP = 128         # lane-padded hidden width
VP = 128         # lane-padded vocab width


def decoder_kernel(tokens_ref,                                   # (T,) int32, SMEM (scalar prefetch)
                   emb_ref, w_ih_ref, b_ih_ref, w_hh_ref, b_hh_ref,
                   h0_ref, w_out_ref, b_out_ref,
                   out_ref, h_out_ref,
                   h_scratch):
    t = pl.program_id(0)

    @pl.when(t == 0)
    def _():
        h_scratch[...] = h0_ref[...]

    # --- embedding lookup (single row) + ReLU -------------------------------
    idx = tokens_ref[t]
    x = jnp.maximum(emb_ref[pl.ds(idx, 1), :], 0.0)               # (1, HP)
    h = h_scratch[...]                                            # (1, HP)

    # --- single GRU step, gates fused into two matmuls (r, z, n blocks) -----
    gi = jnp.dot(x, w_ih_ref[...], preferred_element_type=jnp.float32) + b_ih_ref[...]
    gh = jnp.dot(h, w_hh_ref[...], preferred_element_type=jnp.float32) + b_hh_ref[...]

    r = jax.nn.sigmoid(gi[:, 0:HP] + gh[:, 0:HP])
    z = jax.nn.sigmoid(gi[:, HP:2 * HP] + gh[:, HP:2 * HP])
    n = jnp.tanh(gi[:, 2 * HP:3 * HP] + r * gh[:, 2 * HP:3 * HP])
    h_new = (1.0 - z) * n + z * h                                 # (1, HP)
    h_scratch[...] = h_new

    # --- output projection + log-softmax over the real vocab lanes ----------
    logits = jnp.dot(h_new, w_out_ref[...],
                     preferred_element_type=jnp.float32) + b_out_ref[...]     # (1, VP)
    lane = jax.lax.broadcasted_iota(jnp.int32, (1, VP), 1)
    valid = lane < VOCAB
    logits = jnp.where(valid, logits, -1e30)
    m = jnp.max(logits, axis=1, keepdims=True)
    shifted = logits - m
    lse = jnp.log(jnp.sum(jnp.where(valid, jnp.exp(shifted), 0.0),
                          axis=1, keepdims=True))
    out_ref[0] = shifted - lse                                    # (1, VP) lane-dense row

    @pl.when(t == pl.num_programs(0) - 1)
    def _():
        h_out_ref[...] = h_new


def prepare_params(emb, w_ih, b_ih, w_hh, b_hh, w_out, b_out):
    """Pack PyTorch-layout weights into the padded, fused x @ W kernel layout."""
    emb_p = jnp.zeros((VOCAB, HP), jnp.float32).at[:, :HIDDEN].set(emb)

    def pack_w(w):       # torch (3H, H) -> (HP, 3*HP); gate g occupies lanes [g*HP, g*HP+H)
        out = jnp.zeros((HP, 3 * HP), jnp.float32)
        for g in range(3):
            out = out.at[:HIDDEN, g * HP:g * HP + HIDDEN].set(
                w[g * HIDDEN:(g + 1) * HIDDEN, :].T)
        return out

    def pack_b(b):       # torch (3H,) -> (1, 3*HP)
        out = jnp.zeros((1, 3 * HP), jnp.float32)
        for g in range(3):
            out = out.at[0, g * HP:g * HP + HIDDEN].set(b[g * HIDDEN:(g + 1) * HIDDEN])
        return out

    w_out_p = jnp.zeros((HP, VP), jnp.float32).at[:HIDDEN, :VOCAB].set(w_out.T)
    b_out_p = jnp.zeros((1, VP), jnp.float32).at[0, :VOCAB].set(b_out)
    return (emb_p, pack_w(w_ih), pack_b(b_ih), pack_w(w_hh), pack_b(b_hh),
            w_out_p, b_out_p)


def decoder_forward(tokens, hidden, packed):
    """Run the DecoderRNN forward T times (teacher forced) in one kernel.

    tokens: (T,) int32; hidden: (1, 1, HIDDEN) f32.
    Returns (log_probs (T, VOCAB), final hidden (1, 1, HIDDEN)).
    """
    emb_p, w_ih_p, b_ih_p, w_hh_p, b_hh_p, w_out_p, b_out_p = packed
    T = tokens.shape[0]
    tokens = tokens.astype(jnp.int32)
    h0 = jnp.zeros((1, HP), jnp.float32).at[:, :HIDDEN].set(hidden.reshape(1, HIDDEN))

    # Constant index_maps -> weight blocks stay resident in VMEM for the whole grid.
    const2d = lambda shape: pl.BlockSpec(shape, lambda t, tok: (0, 0))

    grid_spec = pltpu.PrefetchScalarGridSpec(
        num_scalar_prefetch=1,               # tokens land in SMEM before the grid runs
        grid=(T,),
        in_specs=[
            const2d((VOCAB, HP)),            # embedding table
            const2d((HP, 3 * HP)),           # fused W_ih (r,z,n lane blocks)
            const2d((1, 3 * HP)),            # fused b_ih
            const2d((HP, 3 * HP)),           # fused W_hh
            const2d((1, 3 * HP)),            # fused b_hh
            const2d((1, HP)),                # initial hidden
            const2d((HP, VP)),               # output projection
            const2d((1, VP)),                # output bias
        ],
        out_specs=(
            pl.BlockSpec((1, 1, VP), lambda t, tok: (t, 0, 0)),   # per-step log-probs
            pl.BlockSpec((1, HP), lambda t, tok: (0, 0)),         # final hidden (written once)
        ),
        scratch_shapes=[pltpu.VMEM((1, HP), jnp.float32)],        # resident hidden state
    )

    out, h_out = pl.pallas_call(
        decoder_kernel,
        grid_spec=grid_spec,
        out_shape=(jax.ShapeDtypeStruct((T, 1, VP), jnp.float32),
                   jax.ShapeDtypeStruct((1, HP), jnp.float32)),
        compiler_params=pltpu.CompilerParams(dimension_semantics=("arbitrary",)),
    )(tokens, emb_p, w_ih_p, b_ih_p, w_hh_p, b_hh_p, h0, w_out_p, b_out_p)

    return out.reshape(T, VP)[:, :VOCAB], h_out[:, :HIDDEN].reshape(1, 1, HIDDEN)


def reference_forward(tokens, hidden, raw):
    """Pure-JAX replica of T applications of DecoderRNN.forward (PyTorch layouts)."""
    emb, w_ih, b_ih, w_hh, b_hh, w_out, b_out = raw
    h = hidden.reshape(1, HIDDEN)
    outs = []
    for t in range(tokens.shape[0]):
        x = jnp.maximum(emb[tokens[t]], 0.0)[None, :]
        gi = x @ w_ih.T + b_ih
        gh = h @ w_hh.T + b_hh
        r = jax.nn.sigmoid(gi[:, :HIDDEN] + gh[:, :HIDDEN])
        z = jax.nn.sigmoid(gi[:, HIDDEN:2 * HIDDEN] + gh[:, HIDDEN:2 * HIDDEN])
        n = jnp.tanh(gi[:, 2 * HIDDEN:] + r * gh[:, 2 * HIDDEN:])
        h = (1.0 - z) * n + z * h
        logits = h @ w_out.T + b_out
        outs.append(jax.nn.log_softmax(logits, axis=1))
    return jnp.concatenate(outs, axis=0), h.reshape(1, 1, HIDDEN)


if __name__ == "__main__":
    key = jax.random.PRNGKey(0)
    ks = jax.random.split(key, 9)
    scale = 1.0 / (HIDDEN ** 0.5)

    # Deterministic synthetic parameters in the PyTorch module's native layouts.
    emb = jax.random.normal(ks[0], (VOCAB, HIDDEN), jnp.float32)                          # nn.Embedding(V, H)
    w_ih = jax.random.uniform(ks[1], (3 * HIDDEN, HIDDEN), jnp.float32, -scale, scale)    # GRU weight_ih_l0
    b_ih = jax.random.uniform(ks[2], (3 * HIDDEN,), jnp.float32, -scale, scale)           # GRU bias_ih_l0
    w_hh = jax.random.uniform(ks[3], (3 * HIDDEN, HIDDEN), jnp.float32, -scale, scale)    # GRU weight_hh_l0
    b_hh = jax.random.uniform(ks[4], (3 * HIDDEN,), jnp.float32, -scale, scale)           # GRU bias_hh_l0
    w_out = jax.random.uniform(ks[5], (VOCAB, HIDDEN), jnp.float32, -scale, scale)        # nn.Linear(H, V)
    b_out = jax.random.uniform(ks[6], (VOCAB,), jnp.float32, -scale, scale)
    raw = (emb, w_ih, b_ih, w_hh, b_hh, w_out, b_out)

    hidden = jax.random.normal(ks[7], (1, 1, HIDDEN), jnp.float32)
    T = 8
    tokens = jax.random.randint(ks[8], (T,), 0, VOCAB, jnp.int32)

    packed = prepare_params(*raw)
    out, h_new = decoder_forward(tokens, hidden, packed)
    jax.block_until_ready((out, h_new))

    ref_out, ref_h = reference_forward(tokens, hidden, raw)
    assert bool(jnp.allclose(out, ref_out, atol=1e-5, rtol=1e-5)), "log-softmax output mismatch"
    assert bool(jnp.allclose(h_new, ref_h, atol=1e-5, rtol=1e-5)), "hidden state mismatch"

    print("KERNEL_OK")
</pallas_src>

<mosaic_0001>
module attributes {stable_mosaic.version = 11 : i64} {
  func.func @decoder_kernel(%arg0: i32, %arg1: memref<8xi32, #tpu.memory_space<smem>>, %arg2: memref<16x128xf32, #tpu.memory_space<vmem>>, %arg3: memref<128x384xf32, #tpu.memory_space<vmem>>, %arg4: memref<1x384xf32, #tpu.memory_space<vmem>>, %arg5: memref<128x384xf32, #tpu.memory_space<vmem>>, %arg6: memref<1x384xf32, #tpu.memory_space<vmem>>, %arg7: memref<1x128xf32, #tpu.memory_space<vmem>>, %arg8: memref<128x128xf32, #tpu.memory_space<vmem>>, %arg9: memref<1x128xf32, #tpu.memory_space<vmem>>, %arg10: memref<1x1x128xf32, #tpu.memory_space<vmem>>, %arg11: memref<1x128xf32, #tpu.memory_space<vmem>>, %arg12: memref<1x128xf32, #tpu.memory_space<vmem>>) attributes {dimension_semantics = [#tpu.dimension_semantics<arbitrary>], iteration_bounds = array<i64: 8>, scalar_prefetch = 1 : i64, scratch_operands = 1 : i64, tpu.core_type = #tpu.core_type<tc>, window_params = [{pipeline_mode = #tpu.pipeline_mode<synchronous>, transform_indices = @transform_0, window_bounds = array<i64: 16, 128>}, {pipeline_mode = #tpu.pipeline_mode<synchronous>, transform_indices = @transform_1, window_bounds = array<i64: 128, 384>}, {pipeline_mode = #tpu.pipeline_mode<synchronous>, transform_indices = @transform_2, window_bounds = array<i64: 1, 384>}, {pipeline_mode = #tpu.pipeline_mode<synchronous>, transform_indices = @transform_3, window_bounds = array<i64: 128, 384>}, {pipeline_mode = #tpu.pipeline_mode<synchronous>, transform_indices = @transform_4, window_bounds = array<i64: 1, 384>}, {pipeline_mode = #tpu.pipeline_mode<synchronous>, transform_indices = @transform_5, window_bounds = array<i64: 1, 128>}, {pipeline_mode = #tpu.pipeline_mode<synchronous>, transform_indices = @transform_6, window_bounds = array<i64: 128, 128>}, {pipeline_mode = #tpu.pipeline_mode<synchronous>, transform_indices = @transform_7, window_bounds = array<i64: 1, 128>}, {transform_indices = @transform_8, window_bounds = array<i64: 1, 1, 128>}, {pipeline_mode = #tpu.pipeline_mode<synchronous>, transform_indices = @transform_9, window_bounds = array<i64: 1, 128>}]} {
    %c0_i32 = arith.constant 0 : i32
    %0 = arith.cmpi eq, %arg0, %c0_i32 : i32
    %1 = arith.extui %0 : i1 to i32
    %c0_i32_0 = arith.constant 0 : i32
    %2 = arith.cmpi ne, %1, %c0_i32_0 : i32
    scf.if %2 {
      %c0_31 = arith.constant 0 : index
      %c0_32 = arith.constant 0 : index
      %72 = vector.load %arg7[%c0_31, %c0_32] : memref<1x128xf32, #tpu.memory_space<vmem>>, vector<1x128xf32>
      %c0_33 = arith.constant 0 : index
      %c0_34 = arith.constant 0 : index
      %73 = vector.load %arg12[%c0_33, %c0_34] : memref<1x128xf32, #tpu.memory_space<vmem>>, vector<1x128xf32>
      tpu.vector_store %arg12[%c0_33, %c0_34], %72 {strides = array<i32>} : memref<1x128xf32, #tpu.memory_space<vmem>>, vector<1x128xf32>,
    } else {
    }
    %3 = arith.index_cast %arg0 : i32 to index
    %4 = memref.load %arg1[%3] : memref<8xi32, #tpu.memory_space<smem>>
    %5 = arith.index_cast %4 : i32 to index
    %c0 = arith.constant 0 : index
    %6 = vector.load %arg2[%5, %c0] : memref<16x128xf32, #tpu.memory_space<vmem>>, vector<1x128xf32>
    %cst = arith.constant 0.000000e+00 : f32
    %7 = vector.broadcast %cst : f32 to vector<1x128xf32>
    %8 = arith.maximumf %6, %7 : vector<1x128xf32>
    %c0_1 = arith.constant 0 : index
    %c0_2 = arith.constant 0 : index
    %9 = vector.load %arg12[%c0_1, %c0_2] : memref<1x128xf32, #tpu.memory_space<vmem>>, vector<1x128xf32>
    %c0_3 = arith.constant 0 : index
    %c0_4 = arith.constant 0 : index
    %10 = vector.load %arg3[%c0_3, %c0_4] : memref<128x384xf32, #tpu.memory_space<vmem>>, vector<128x384xf32>
    %cst_5 = arith.constant dense<0.000000e+00> : vector<1x384xf32>
    %11 = tpu.matmul %8, %10, %cst_5 {dimension_numbers = #tpu.dot_dimension_numbers<[1], [0], [0], [1], [0, 0, 1, 1], [], []>} : vector<1x128xf32>, vector<128x384xf32>, vector<1x384xf32> -> vector<1x384xf32>
    %c0_6 = arith.constant 0 : index
    %c0_7 = arith.constant 0 : index
    %12 = vector.load %arg4[%c0_6, %c0_7] : memref<1x384xf32, #tpu.memory_space<vmem>>, vector<1x384xf32>
    %13 = arith.addf %11, %12 : vector<1x384xf32>
    %c0_8 = arith.constant 0 : index
    %c0_9 = arith.constant 0 : index
    %14 = vector.load %arg5[%c0_8, %c0_9] : memref<128x384xf32, #tpu.memory_space<vmem>>, vector<128x384xf32>
    %cst_10 = arith.constant dense<0.000000e+00> : vector<1x384xf32>
    %15 = tpu.matmul %9, %14, %cst_10 {dimension_numbers = #tpu.dot_dimension_numbers<[1], [0], [0], [1], [0, 0, 1, 1], [], []>} : vector<1x128xf32>, vector<128x384xf32>, vector<1x384xf32> -> vector<1x384xf32>
    %c0_11 = arith.constant 0 : index
    %c0_12 = arith.constant 0 : index
    %16 = vector.load %arg6[%c0_11, %c0_12] : memref<1x384xf32, #tpu.memory_space<vmem>>, vector<1x384xf32>
    %17 = arith.addf %15, %16 : vector<1x384xf32>
    %18 = vector.extract_strided_slice %13 {offsets = [0, 0], sizes = [1, 128], strides = [1, 1]} : vector<1x384xf32> to vector<1x128xf32>
    %19 = vector.extract_strided_slice %17 {offsets = [0, 0], sizes = [1, 128], strides = [1, 1]} : vector<1x384xf32> to vector<1x128xf32>
    %20 = arith.addf %18, %19 : vector<1x128xf32>
    %21 = arith.negf %20 : vector<1x128xf32>
    %22 = math.exp %21 : vector<1x128xf32>
    %cst_13 = arith.constant 1.000000e+00 : f32
    %23 = vector.broadcast %cst_13 : f32 to vector<1x128xf32>
    %24 = arith.addf %23, %22 : vector<1x128xf32>
    %25 = arith.divf %23, %24 : vector<1x128xf32>
    %26 = vector.extract_strided_slice %13 {offsets = [0, 128], sizes = [1, 128], strides = [1, 1]} : vector<1x384xf32> to vector<1x128xf32>
    %27 = vector.extract_strided_slice %17 {offsets = [0, 128], sizes = [1, 128], strides = [1, 1]} : vector<1x384xf32> to vector<1x128xf32>
    %28 = arith.addf %26, %27 : vector<1x128xf32>
    %29 = arith.negf %28 : vector<1x128xf32>
    %30 = math.exp %29 : vector<1x128xf32>
    %cst_14 = arith.constant 1.000000e+00 : f32
    %31 = vector.broadcast %cst_14 : f32 to vector<1x128xf32>
    %32 = arith.addf %31, %30 : vector<1x128xf32>
    %33 = arith.divf %31, %32 : vector<1x128xf32>
    %34 = vector.extract_strided_slice %13 {offsets = [0, 256], sizes = [1, 128], strides = [1, 1]} : vector<1x384xf32> to vector<1x128xf32>
    %35 = vector.extract_strided_slice %17 {offsets = [0, 256], sizes = [1, 128], strides = [1, 1]} : vector<1x384xf32> to vector<1x128xf32>
    %36 = arith.mulf %25, %35 : vector<1x128xf32>
    %37 = arith.addf %34, %36 : vector<1x128xf32>
    %38 = math.tanh %37 : vector<1x128xf32>
    %cst_15 = arith.constant 1.000000e+00 : f32
    %39 = vector.broadcast %cst_15 : f32 to vector<1x128xf32>
    %40 = arith.subf %39, %33 : vector<1x128xf32>
    %41 = arith.mulf %40, %38 : vector<1x128xf32>
    %42 = arith.mulf %33, %9 : vector<1x128xf32>
    %43 = arith.addf %41, %42 : vector<1x128xf32>
    %c0_16 = arith.constant 0 : index
    %c0_17 = arith.constant 0 : index
    %44 = vector.load %arg12[%c0_16, %c0_17] : memref<1x128xf32, #tpu.memory_space<vmem>>, vector<1x128xf32>
    tpu.vector_store %arg12[%c0_16, %c0_17], %43 {strides = array<i32>} : memref<1x128xf32, #tpu.memory_space<vmem>>, vector<1x128xf32>,
    %c0_18 = arith.constant 0 : index
    %c0_19 = arith.constant 0 : index
    %45 = vector.load %arg8[%c0_18, %c0_19] : memref<128x128xf32, #tpu.memory_space<vmem>>, vector<128x128xf32>
    %cst_20 = arith.constant dense<0.000000e+00> : vector<1x128xf32>
    %46 = tpu.matmul %43, %45, %cst_20 {dimension_numbers = #tpu.dot_dimension_numbers<[1], [0], [0], [1], [0, 0, 1, 1], [], []>} : vector<1x128xf32>, vector<128x128xf32>, vector<1x128xf32> -> vector<1x128xf32>
    %c0_21 = arith.constant 0 : index
    %c0_22 = arith.constant 0 : index
    %47 = vector.load %arg9[%c0_21, %c0_22] : memref<1x128xf32, #tpu.memory_space<vmem>>, vector<1x128xf32>
    %48 = arith.addf %46, %47 : vector<1x128xf32>
    %49 = tpu.iota {dimensions = array<i32: 1>} : vector<1x128xi32>
    %c16_i32 = arith.constant 16 : i32
    %50 = vector.broadcast %c16_i32 : i32 to vector<1x128xi32>
    %51 = arith.cmpi slt, %49, %50 : vector<1x128xi32>
    %cst_23 = arith.constant -1.000000e+30 : f32
    %52 = vector.broadcast %cst_23 : f32 to vector<1x128xf32>
    %53 = arith.select %51, %48, %52 : vector<1x128xi1>, vector<1x128xf32>
    %cst_24 = arith.constant dense<0xFF800000> : vector<1xf32>
    %54 = vector.multi_reduction <maximumf>, %53, %cst_24 [1] : vector<1x128xf32> to vector<1xf32>
    %55 = vector.shape_cast %54 : vector<1xf32> to vector<1x1xf32>
    %56 = vector.broadcast %55 : vector<1x1xf32> to vector<1x128xf32>
    %57 = arith.subf %53, %56 : vector<1x128xf32>
    %58 = math.exp %57 : vector<1x128xf32>
    %cst_25 = arith.constant 0.000000e+00 : f32
    %59 = vector.broadcast %cst_25 : f32 to vector<1x128xf32>
    %60 = arith.select %51, %58, %59 : vector<1x128xi1>, vector<1x128xf32>
    %cst_26 = arith.constant dense<0.000000e+00> : vector<1xf32>
    %61 = vector.multi_reduction <add>, %60, %cst_26 [1] : vector<1x128xf32> to vector<1xf32>
    %62 = vector.shape_cast %61 : vector<1xf32> to vector<1x1xf32>
    %63 = math.log %62 : vector<1x1xf32>
    %64 = vector.broadcast %63 : vector<1x1xf32> to vector<1x128xf32>
    %65 = arith.subf %57, %64 : vector<1x128xf32>
    %c0_27 = arith.constant 0 : index
    %c0_28 = arith.constant 0 : index
    %c0_29 = arith.constant 0 : index
    %66 = vector.load %arg10[%c0_27, %c0_28, %c0_29] : memref<1x1x128xf32, #tpu.memory_space<vmem>>, vector<1x1x128xf32>
    %67 = vector.shape_cast %66 : vector<1x1x128xf32> to vector<1x128xf32>
    %68 = vector.shape_cast %65 : vector<1x128xf32> to vector<1x1x128xf32>
    tpu.vector_store %arg10[%c0_27, %c0_28, %c0_29], %68 {strides = array<i32>} : memref<1x1x128xf32, #tpu.memory_space<vmem>>, vector<1x1x128xf32>,
    %c7_i32 = arith.constant 7 : i32
    %69 = arith.cmpi eq, %arg0, %c7_i32 : i32
    %70 = arith.extui %69 : i1 to i32
    %c0_i32_30 = arith.constant 0 : i32
    %71 = arith.cmpi ne, %70, %c0_i32_30 : i32
    scf.if %71 {
      %c0_31 = arith.constant 0 : index
      %c0_32 = arith.constant 0 : index
      %72 = vector.load %arg11[%c0_31, %c0_32] : memref<1x128xf32, #tpu.memory_space<vmem>>, vector<1x128xf32>
      tpu.vector_store %arg11[%c0_31, %c0_32], %43 {strides = array<i32>} : memref<1x128xf32, #tpu.memory_space<vmem>>, vector<1x128xf32>,
    } else {
    }
    return
  }
  func.func @transform_0(%arg0: i32, %arg1: memref<8xi32, #tpu.memory_space<smem>>) -> (i32, i32) {
    %c0_i32 = arith.constant 0 : i32
    %c0_i32_0 = arith.constant 0 : i32
    %c0_i32_1 = arith.constant 0 : i32
    return %c0_i32, %c0_i32_0 : i32, i32
  }
  func.func @transform_1(%arg0: i32, %arg1: memref<8xi32, #tpu.memory_space<smem>>) -> (i32, i32) {
    %c0_i32 = arith.constant 0 : i32
    %c0_i32_0 = arith.constant 0 : i32
    %c0_i32_1 = arith.constant 0 : i32
    return %c0_i32, %c0_i32_0 : i32, i32
  }
  func.func @transform_2(%arg0: i32, %arg1: memref<8xi32, #tpu.memory_space<smem>>) -> (i32, i32) {
    %c0_i32 = arith.constant 0 : i32
    %c0_i32_0 = arith.constant 0 : i32
    %c0_i32_1 = arith.constant 0 : i32
    return %c0_i32, %c0_i32_0 : i32, i32
  }
  func.func @transform_3(%arg0: i32, %arg1: memref<8xi32, #tpu.memory_space<smem>>) -> (i32, i32) {
    %c0_i32 = arith.constant 0 : i32
    %c0_i32_0 = arith.constant 0 : i32
    %c0_i32_1 = arith.constant 0 : i32
    return %c0_i32, %c0_i32_0 : i32, i32
  }
  func.func @transform_4(%arg0: i32, %arg1: memref<8xi32, #tpu.memory_space<smem>>) -> (i32, i32) {
    %c0_i32 = arith.constant 0 : i32
    %c0_i32_0 = arith.constant 0 : i32
    %c0_i32_1 = arith.constant 0 : i32
    return %c0_i32, %c0_i32_0 : i32, i32
  }
  func.func @transform_5(%arg0: i32, %arg1: memref<8xi32, #tpu.memory_space<smem>>) -> (i32, i32) {
    %c0_i32 = arith.constant 0 : i32
    %c0_i32_0 = arith.constant 0 : i32
    %c0_i32_1 = arith.constant 0 : i32
    return %c0_i32, %c0_i32_0 : i32, i32
  }
  func.func @transform_6(%arg0: i32, %arg1: memref<8xi32, #tpu.memory_space<smem>>) -> (i32, i32) {
    %c0_i32 = arith.constant 0 : i32
    %c0_i32_0 = arith.constant 0 : i32
    %c0_i32_1 = arith.constant 0 : i32
    return %c0_i32, %c0_i32_0 : i32, i32
  }
  func.func @transform_7(%arg0: i32, %arg1: memref<8xi32, #tpu.memory_space<smem>>) -> (i32, i32) {
    %c0_i32 = arith.constant 0 : i32
    %c0_i32_0 = arith.constant 0 : i32
    %c0_i32_1 = arith.constant 0 : i32
    return %c0_i32, %c0_i32_0 : i32, i32
  }
  func.func @transform_8(%arg0: i32, %arg1: memref<8xi32, #tpu.memory_space<smem>>) -> (i32, i32, i32) {
    %c0_i32 = arith.constant 0 : i32
    %c0_i32_0 = arith.constant 0 : i32
    %c0_i32_1 = arith.constant 0 : i32
    return %arg0, %c0_i32, %c0_i32_0 : i32, i32, i32
  }
  func.func @transform_9(%arg0: i32, %arg1: memref<8xi32, #tpu.memory_space<smem>>) -> (i32, i32) {
    %c0_i32 = arith.constant 0 : i32
    %c0_i32_0 = arith.constant 0 : i32
    %c0_i32_1 = arith.constant 0 : i32
    return %c0_i32, %c0_i32_0 : i32, i32
  }
}

</mosaic_0001>

<bundles_post_ra>
// kernel: tpu_custom_call.1
= control target key start
LH: loop header
LB: loop body
LE: loop exit
PB: predicated region body
PF: predicated region fallthrough
CT: control target
= control target key end

     0   :  { %s1549_s13 = smov [#allocation4]   ;;  %s1880_s0 = inlined_call_operand.hbm [shape: s32[8], index: 0, kind: input, shape index: {}]   ;;  %s1881_s1 = inlined_call_operand.hbm [shape: f32[16,128], index: 1, kind: input, shape index: {}]   ;;  %s1882_s2 = inlined_call_operand.hbm [shape: f32[128,384], index: 2, kind: input, shape index: {}]   ;;  %s1883_s3 = inlined_call_operand.vmem [shape: f32[1,384], index: 3, kind: input, shape index: {}]   ;;  %s1884_s4 = inlined_call_operand.hbm [shape: f32[128,384], index: 4, kind: input, shape index: {}]   ;;  %s1885_s5 = inlined_call_operand.vmem [shape: f32[1,384], index: 5, kind: input, shape index: {}]   ;;  %s1886_s6 = inlined_call_operand.vmem [shape: f32[1,128], index: 6, kind: input, shape index: {}]   ;;  %s1887_s7 = inlined_call_operand.hbm [shape: f32[128,128], index: 7, kind: input, shape index: {}]   ;;  %s1888_s8 = inlined_call_operand.vmem [shape: f32[1,128], index: 8, kind: input, shape index: {}]   ;;  %s1889_s9 = inlined_call_operand.hbm [shape: f32[8,1,128], index: 9, kind: output, shape index: {0}]   ;;  %s1890_s10 = inlined_call_operand.hbm [shape: f32[1,128], index: 10, kind: output, shape index: {1}]  }
   0x1   :  { %1895 = sst [smem:[#allocation22_spill]] %s1881_s1 }
   0x2   :  { %17 = dma.hbm_to_smem %s1880_s0, 16, %s1549_s13, [#allocation3] }
   0x3   :  { %1511 = dma.done.wait [#allocation3], 16 }
   0x4   :  { %1512 = vsyncadd [#allocation3], 4294967280 }
   0x5   :  { %19 = sfence }
   0x6   :  { %20 = vsyncpa [#allocation6], 0 }
   0x7   :  { %21 = vsyncpa [#allocation9], 0 }
   0x8   :  { %22 = vsyncpa [#allocation12], 0 }
   0x9   :  { %23 = vsyncpa [#allocation7], 0 }
   0xa   :  { %25 = vsyncpa [#allocation7 + $0x1], 0 }
   0xb   :  { %26 = vsyncpa [#allocation15], 0  ;;  %s1620_s16 = smov 0   ;;  %s1622_s17 = smov 0  }
   0xc   :  { %s1624_s18 = smov 0   ;;  %s1626_s19 = smov 0  }
   0xd LB: > { %s1641_s0 = sadd.s32 4294967295, %s1547_s19   ;;  %s1049_s20 = sadd.s32 4294967294, %s1547_s19   ;;  %s1547_s19 = sphi %s1626_s19, %s1918_s19   ;;  %s1543_s18 = sphi %s1624_s18, %s1917_s18   ;;  %s1539_s17 = sphi %s1622_s17, %s1916_s17   ;;  %s1535_s16 = sphi %s1620_s16, %s1915_s16  }
   0xe   : > { %s1645_s21 = sadd.s32 1, %s1547_s19   ;;  %s207_s22 = sadd.s32 1, %s1543_s18 }
   0xf   : > { %s204_s23 = ssub.s32 %s1547_s19, %s1645_s21  ;;  %p217_p0 = scmp.ne.s32.totalorder %s1543_s18, %s1539_s17 }
  0x10   : > { %p205_p1 = scmp.eq.s32.totalorder %s204_s23, 0  ;;  %p1891_p2 = scmp.eq.s32.totalorder %s1641_s0, 7 }
  0x11   : > { %p223_p3 = scmp.ne.s32.totalorder %s1539_s17, %s1535_s16  ;;  %p224_p4 = scmp.eq.s32.totalorder %s1049_s20, 7 }
  0x12   : > { %s1656_s24 = scalar_select %p205_p1, %s1543_s18, %s207_s22  }
  0x13   : > { %p1660_p5 = por %p1891_p2, %p217_p0  ;;  %p1664_p6 = por %p224_p4, %p223_p3 }
  0x14   : > { %p1050_p7 = scmp.ge.s32.totalorder %s1547_s19, 1  ;;  %p252_p8 = scmp.lt.s32.totalorder %s1547_s19, 9 }
  0x15   : > { %s1897_s26 = scalar_select %p1664_p6, 1, 0 }
  0x16   : > { %p1894_p10 = scmp.eq.s32.totalorder %s1641_s0, 0  ;;  %p1672_p11 = pnand %p1050_p7, %p252_p8 }
  0x17   : > { %s1550_s28 = smov [#allocation8]   ;;  %s1551_s11 = smov [#allocation5]  }
  0x18   : > { %s277_s29 = sshll.u32 %s1550_s28, 4  ;;  %p1247_p12 = pneg %p1672_p11  ;;  %s278_s29 = int_to_ptr.vmem [resolvable:$true] %s277_s29 }
  0x19   : > { %s264_s12 = sshll.u32 %s1551_s11, 4  ;;  %s1352_s13 = scalar_lea.vmem %s278_s29, 6144  ;;  %s265_s12 = int_to_ptr.vmem [resolvable:$true] %s264_s12 }
  0x1a   : > { %p1680_p13 = pnand %p1894_p10, %p1247_p12  ;;  %p1353_p1 = scmp.ne.s32.totalorder %s278_s29, %s1352_s13 }
  0x1b   : > { %p1360_p7 = scmp.lt.s32.totalorder %s278_s29, %s278_s29  ;;  %p1361_p8 = scmp.lt.s32.totalorder %s1352_s13, %s1352_s13 }
  0x1c   : > { %p1343_p0 = pneg %p1680_p13 }
  0x1d   : > { %p1362_p2 = por %p1361_p8, %p1360_p7 }
  0x1e   : > { %p1355_p3 = pnand %p1353_p1, %p1343_p0 }
  0x20   : > { %p1356_p4 = pneg %p1355_p3 }
  0x22   : > { %p1363_p12 = pnand %p1362_p2, %p1356_p4 }
  0x24   : > { %1366 = shalt.err (!%p1363_p12)
}
  0x25   : > { %s1892_s14 = smov 384   ;;  %s1893_s15 = smov 24  }
  0x26   : > { %1253 = dma.hbm_to_vmem [thread:$0]  (!%p1680_p13), %s1882_s2, 6144, %s278_s29, [#allocation9], %s1892_s14, %s1892_s14, %s1893_s15  }
  0x27   : > { %s1378_s23 = scalar_lea.vmem %s265_s12, 256  ;;  %p1386_p2 = scmp.lt.s32.totalorder %s265_s12, %s265_s12 }
  0x28   : > { %p1379_p1 = scmp.ne.s32.totalorder %s265_s12, %s1378_s23  ;;  %p1387_p4 = scmp.lt.s32.totalorder %s1378_s23, %s1378_s23 }
  0x2a   : > { %p1381_p3 = pnand %p1379_p1, %p1343_p0  ;;  %p1388_p8 = por %p1387_p4, %p1386_p2 }
  0x2c   : > { %p1382_p7 = pneg %p1381_p3 }
  0x2e   : > { %p1389_p12 = pnand %p1388_p8, %p1382_p7 }
  0x30   : > { %1392 = shalt.err (!%p1389_p12)
}
  0x31   : > { %s1554_s28 = smov 128   ;;  %s1555_s11 = smov 8  }
  0x32   : > { %s1900_s1 = sld [smem:[#allocation22_spill]]  ;;  %s1556_s20 = smov [#allocation10]  }
  0x33   : > { %s293_s22 = sshll.u32 %s1556_s20, 4  ;;  %s1557_s14 = smov [#allocation11]   ;;  %s294_s22 = int_to_ptr.vmem [resolvable:$true] %s293_s22 }
  0x34   : > { %s312_s15 = sshll.u32 %s1557_s14, 4  ;;  %s1404_s23 = scalar_lea.vmem %s294_s22, 6144  ;;  %s313_s15 = int_to_ptr.vmem [resolvable:$true] %s312_s15 }
  0x35   : > { %p1405_p1 = scmp.ne.s32.totalorder %s294_s22, %s1404_s23  ;;  %p1412_p2 = scmp.lt.s32.totalorder %s294_s22, %s294_s22 }
  0x36   : > { %p1413_p4 = scmp.lt.s32.totalorder %s1404_s23, %s1404_s23 }
  0x37   : > { %p1407_p3 = pnand %p1405_p1, %p1343_p0 }
  0x38   : > { %1250 = dma.hbm_to_vmem [thread:$0]  (!%p1680_p13), %s1900_s1, 256, %s265_s12, [#allocation6], %s1554_s28, %s1554_s28, %s1555_s11  }
  0x39   : > { %p1408_p7 = pneg %p1407_p3  ;;  %p1414_p8 = por %p1413_p4, %p1412_p2 }
  0x3b   : > { %p1415_p12 = pnand %p1414_p8, %p1408_p7 }
  0x3d   : > { %1418 = shalt.err (!%p1415_p12)
}
  0x3e   : > { %s1901_s12 = smov 24   ;;  %s1902_s29 = smov 384  }
  0x3f   : > { %1256 = dma.hbm_to_vmem [thread:$0]  (!%p1680_p13), %s1884_s4, 6144, %s294_s22, [#allocation9], %s1902_s29, %s1902_s29, %s1901_s12  }
  0x40   : > { %s1430_s20 = scalar_lea.vmem %s313_s15, 2048  ;;  %p1438_p10 = scmp.lt.s32.totalorder %s313_s15, %s313_s15 }
  0x41   : > { %p1431_p9 = scmp.ne.s32.totalorder %s313_s15, %s1430_s20  ;;  %p1439_p2 = scmp.lt.s32.totalorder %s1430_s20, %s1430_s20 }
  0x43   : > { %p1433_p1 = pnand %p1431_p9, %p1343_p0  ;;  %p1440_p7 = por %p1439_p2, %p1438_p10 }
  0x45   : > { %p1434_p3 = pneg %p1433_p1 }
  0x47   : > { %p1441_p4 = pnand %p1440_p7, %p1434_p3 }
  0x49   : > { %1444 = shalt.err (!%p1441_p4)
}
  0x4a   : > { %1259 = dma.hbm_to_vmem [thread:$0]  (!%p1680_p13), %s1887_s7, 2048, %s313_s15, [#allocation12], %s1554_s28, %s1554_s28, %s1555_s11  }
  0x4b   : > { %331 = sbr.rel (%p1672_p11) target bundleno = 967 (0x3c7), region = 52  ;;  %p1903_p9 = scmp.eq.s32.totalorder (!%p1672_p11), %s1641_s0, 0 }
  0x50   : > { %1514 = dma.done.wait (%p1903_p9), [#allocation6], 256   ;;  %p1904_p0 = pmov %p1903_p9 }
  0x52   : > { %1516 = vsyncadd (%p1904_p0), [#allocation6], 4294967040  ;;  %p1905_p10 = pmov %p1904_p0 }
  0x53   : > { %p1906_p8 = pmov %p1904_p0 }
  0x54   : > { %1518 = dma.done.wait (%p1905_p10), [#allocation9], 12288  }
  0x55   : > { %1520 = vsyncadd (%p1906_p8), [#allocation9], 4294955008  ;;  %p1907_p12 = pmov %p1904_p0 }
  0x56   : > { %p1908_p13 = pmov %p1904_p0 }
  0x57   : > { %1522 = dma.done.wait (%p1907_p12), [#allocation12], 2048  }
  0x58   : > { %1524 = vsyncadd (%p1908_p13), [#allocation12], 4294965248  ;;  %s369_s27 = sand.u32 1, %s1539_s17   ;;  %p1909_p11 = scmp.ne.s32.totalorder %s1641_s0, 0 }
  0x59   : > { %s1747_s30 = scalar_lea.vmem [#allocation13], %s369_s27 }
  0x5a   : > { %376 = sbr.rel (%p1909_p11) target bundleno = 97 (0x61), region = 72 }
  0x5f   : > { %v377_v0 = vld [vmem:[%s1886_s6] sm:$0x1] }
  0x60   : > { %378 = vst [vmem:[#allocation2] sm:$0x1] %v377_v0 }
  0x61 PF: > { %v430_v1 = vld [vmem:[#allocation8 + $0x170] sm:$0xff]  ;;  %v429_v2 = vld [vmem:[#allocation8 + $0x168] sm:$0xff]  ;;  %v427_v3 = vld [vmem:[#allocation8 + $0x158] sm:$0xff]  ;;  %v1558_v5 = vmov 0.0   ;;  %vm1559_vm0 = vmmov 0   ;;  %s1760_s11 = sld [smem:[#allocation4 + %s1641_s0]] }
  0x62   : > { %449 = vmatprep.subr.mxu0 %v430_v1  ;;  %v426_v4 = vld [vmem:[#allocation8 + $0x150] sm:$0xff]  ;;  %513 = vmatprep.mubr.f32.mxu0 %v1558_v5  ;;  %v424_v6 = vld [vmem:[#allocation8 + $0x140] sm:$0xff]  ;;  %v423_v7 = vld [vmem:[#allocation8 + $0x138] sm:$0xff]  ;;  %vm909_vm2 = vcmask 1040384   ;;  %p1063_p1 = scmp.ne.s32.totalorder %s1641_s0, 7 }
  0x63   : > { %450 = vmatpush1.msra.mxu0 %v429_v2  ;;  %1120 = vmatprep.subr.mxu1 %v1558_v5  ;;  %v421_v8 = vld [vmem:[#allocation8 + $0x128] sm:$0xff]  ;;  %v420_v9 = vld [vmem:[#allocation8 + $0x120] sm:$0xff]  ;;  %v418_v10 = vld [vmem:[#allocation8 + $0x110] sm:$0xff] }
  0x64   : > { %451 = vmatprep.subr.mxu0 %v427_v3  ;;  %1152 = vmatprep.mubr.msk.f32.mxu1 %vm1559_vm0, %v1558_v5  ;;  %v417_v11 = vld [vmem:[#allocation8 + $0x108] sm:$0xff]  ;;  %v415_v12 = vld [vmem:[#allocation8 + $0xf8] sm:$0xff]  ;;  %v414_v13 = vld [vmem:[#allocation8 + $0xf0] sm:$0xff] }
  0x65   : > { %452 = vmatpush1.msra.mxu0 %v426_v4  ;;  %v412_v14 = vld [vmem:[#allocation8 + $0xe0] sm:$0xff]  ;;  %v411_v15 = vld [vmem:[#allocation8 + $0xd8] sm:$0xff]  ;;  %v409_v17 = vld [vmem:[#allocation8 + $0xc8] sm:$0xff] }
  0x66   : > { %453 = vmatprep.subr.mxu0 %v424_v6  ;;  %v431_v16 = vld [vmem:[#allocation8 + $0x178] sm:$0xff]  ;;  %v428_v18 = vld [vmem:[#allocation8 + $0x160] sm:$0xff]  ;;  %v425_v20 = vld [vmem:[#allocation8 + $0x148] sm:$0xff] }
  0x67   : > { %454 = vmatpush1.msra.mxu0 %v423_v7  ;;  %1121 = vmatpush3.msra.mxu1 %v431_v16  ;;  %v408_v19 = vld [vmem:[#allocation8 + $0xc0] sm:$0xff]  ;;  %v406_v21 = vld [vmem:[#allocation8 + $0xb0] sm:$0xff]  ;;  %v405_v22 = vld [vmem:[#allocation8 + $0xa8] sm:$0xff]  ;;  %s380_s22 = scalar_lea.vmem [#allocation5], %s1760_s11 }
  0x68   : > { %455 = vmatprep.subr.mxu0 %v421_v8  ;;  %1122 = vmatprep.subr.mxu1 %v1558_v5  ;;  %v422_v23 = vld [vmem:[#allocation8 + $0x130] sm:$0xff]  ;;  %v403_v24 = vld [vmem:[#allocation8 + $0x98] sm:$0xff]  ;;  %v400_v27 = vld [vmem:[#allocation8 + $0x80] sm:$0xff] }
  0x69   : > { %456 = vmatpush1.msra.mxu0 %v420_v9  ;;  %1123 = vmatpush3.msra.mxu1 %v428_v18  ;;  %v402_v25 = vld [vmem:[#allocation8 + $0x90] sm:$0xff]  ;;  %v419_v26 = vld [vmem:[#allocation8 + $0x118] sm:$0xff]  ;;  %v416_v29 = vld [vmem:[#allocation8 + $0x100] sm:$0xff] }
  0x6a   : > { %457 = vmatprep.subr.mxu0 %v418_v10  ;;  %1124 = vmatprep.subr.mxu1 %v1558_v5  ;;  %v399_v28 = vld [vmem:[#allocation8 + $0x78] sm:$0xff]  ;;  %v397_v30 = vld [vmem:[#allocation8 + $0x68] sm:$0xff]  ;;  %v396_v31 = vld [vmem:[#allocation8 + $0x60] sm:$0xff] }
  0x6b   : > { %458 = vmatpush1.msra.mxu0 %v417_v11  ;;  %1125 = vmatpush3.msra.mxu1 %v425_v20  ;;  %v413_v32 = vld [vmem:[#allocation8 + $0xe8] sm:$0xff]  ;;  %v394_v33 = vld [vmem:[#allocation8 + $0x50] sm:$0xff]  ;;  %v391_v36 = vld [vmem:[#allocation8 + $0x38] sm:$0xff] }
  0x6c   : > { %459 = vmatprep.subr.mxu0 %v415_v12  ;;  %1126 = vmatprep.subr.mxu1 %v1558_v5  ;;  %v393_v34 = vld [vmem:[#allocation8 + $0x48] sm:$0xff]  ;;  %v410_v35 = vld [vmem:[#allocation8 + $0xd0] sm:$0xff]  ;;  %v407_v38 = vld [vmem:[#allocation8 + $0xb8] sm:$0xff] }
  0x6d   : > { %460 = vmatpush1.msra.mxu0 %v414_v13  ;;  %1127 = vmatpush3.msra.mxu1 %v422_v23  ;;  %v390_v37 = vld [vmem:[#allocation8 + $0x30] sm:$0xff]  ;;  %v388_v39 = vld [vmem:[#allocation8 + $0x20] sm:$0xff]  ;;  %v1769_v40 = vld [vmem:[%s380_s22] sm:$0x1] }
  0x6e   : > { %461 = vmatprep.subr.mxu0 %v412_v14  ;;  %1128 = vmatprep.subr.mxu1 %v1558_v5  ;;  %v387_v41 = vld [vmem:[#allocation8 + $0x18] sm:$0xff]  ;;  %v404_v42 = vld [vmem:[#allocation8 + $0xa0] sm:$0xff]  ;;  %v385_v43 = vld [vmem:[#allocation8 + $0x8] sm:$0xff]  ;;  %v382_v45 = vmax.f32 %v1769_v40, 0.0 }
  0x6f   : > { %462 = vmatpush1.msra.mxu0 %v411_v15  ;;  %1129 = vmatpush3.msra.mxu1 %v419_v26  ;;  %v384_v44 = vld [vmem:[#allocation8] sm:$0xff]  ;;  %v401_v46 = vld [vmem:[#allocation8 + $0x88] sm:$0xff]  ;;  %v636_v47 = vld [vmem:[#allocation10 + $0x170] sm:$0xff] }
  0x70   : > { %463 = vmatprep.subr.mxu0 %v409_v17  ;;  %1130 = vmatprep.subr.mxu1 %v1558_v5  ;;  %v635_v48 = vld [vmem:[#allocation10 + $0x168] sm:$0xff]  ;;  %v633_v49 = vld [vmem:[#allocation10 + $0x158] sm:$0xff]  ;;  %v398_v50 = vld [vmem:[#allocation8 + $0x70] sm:$0xff] }
  0x71   : > { %464 = vmatpush1.msra.mxu0 %v408_v19  ;;  %1131 = vmatpush3.msra.mxu1 %v416_v29  ;;  %v632_v51 = vld [vmem:[#allocation10 + $0x150] sm:$0xff]  ;;  %v630_v52 = vld [vmem:[#allocation10 + $0x140] sm:$0xff]  ;;  %v395_v53 = vld [vmem:[#allocation8 + $0x58] sm:$0xff] }
  0x72   : > { %465 = vmatprep.subr.mxu0 %v406_v21  ;;  %1132 = vmatprep.subr.mxu1 %v1558_v5  ;;  %v629_v54 = vld [vmem:[#allocation10 + $0x138] sm:$0xff]  ;;  %v627_v55 = vld [vmem:[#allocation10 + $0x128] sm:$0xff]  ;;  %v392_v56 = vld [vmem:[#allocation8 + $0x40] sm:$0xff] }
  0x73   : > { %466 = vmatpush1.msra.mxu0 %v405_v22  ;;  %1133 = vmatpush3.msra.mxu1 %v413_v32  ;;  %v626_v57 = vld [vmem:[#allocation10 + $0x120] sm:$0xff]  ;;  %v624_v58 = vld [vmem:[#allocation10 + $0x110] sm:$0xff]  ;;  %v389_v59 = vld [vmem:[#allocation8 + $0x28] sm:$0xff] }
  0x74   : > { %467 = vmatprep.subr.mxu0 %v403_v24  ;;  %1134 = vmatprep.subr.mxu1 %v1558_v5  ;;  %v623_v60 = vld [vmem:[#allocation10 + $0x108] sm:$0xff]  ;;  %v621_v61 = vld [vmem:[#allocation10 + $0xf8] sm:$0xff]  ;;  %v386_v62 = vld [vmem:[#allocation8 + $0x10] sm:$0xff] }
  0x75   : > { %468 = vmatpush1.msra.mxu0 %v402_v25  ;;  %1135 = vmatpush3.msra.mxu1 %v410_v35  ;;  %v620_v63 = vld [vmem:[#allocation10 + $0xf0] sm:$0xff]  ;;  %v618_v0 = vld [vmem:[#allocation10 + $0xe0] sm:$0xff]  ;;  %v617_v1 = vld [vmem:[#allocation10 + $0xd8] sm:$0xff] }
  0x76   : > { %469 = vmatprep.subr.mxu0 %v400_v27  ;;  %1136 = vmatprep.subr.mxu1 %v1558_v5  ;;  %v615_v2 = vld [vmem:[#allocation10 + $0xc8] sm:$0xff]  ;;  %v637_v3 = vld [vmem:[#allocation10 + $0x178] sm:$0xff]  ;;  %v614_v4 = vld [vmem:[#allocation10 + $0xc0] sm:$0xff] }
  0x77   : > { %470 = vmatpush1.msra.mxu0 %v399_v28  ;;  %1137 = vmatpush3.msra.mxu1 %v407_v38  ;;  %v612_v6 = vld [vmem:[#allocation10 + $0xb0] sm:$0xff]  ;;  %v634_v7 = vld [vmem:[#allocation10 + $0x160] sm:$0xff]  ;;  %v611_v8 = vld [vmem:[#allocation10 + $0xa8] sm:$0xff] }
  0x78   : > { %471 = vmatprep.subr.mxu0 %v397_v30  ;;  %1138 = vmatprep.subr.mxu1 %v1558_v5  ;;  %v609_v9 = vld [vmem:[#allocation10 + $0x98] sm:$0xff]  ;;  %v631_v10 = vld [vmem:[#allocation10 + $0x148] sm:$0xff]  ;;  %v608_v11 = vld [vmem:[#allocation10 + $0x90] sm:$0xff] }
  0x79   : > { %472 = vmatpush1.msra.mxu0 %v396_v31  ;;  %1139 = vmatpush3.msra.mxu1 %v404_v42  ;;  %v606_v12 = vld [vmem:[#allocation10 + $0x80] sm:$0xff]  ;;  %v628_v13 = vld [vmem:[#allocation10 + $0x130] sm:$0xff]  ;;  %v605_v14 = vld [vmem:[#allocation10 + $0x78] sm:$0xff] }
  0x7a   : > { %473 = vmatprep.subr.mxu0 %v394_v33  ;;  %1140 = vmatprep.subr.mxu1 %v1558_v5  ;;  %v603_v15 = vld [vmem:[#allocation10 + $0x68] sm:$0xff]  ;;  %v625_v16 = vld [vmem:[#allocation10 + $0x118] sm:$0xff]  ;;  %v602_v17 = vld [vmem:[#allocation10 + $0x60] sm:$0xff] }
  0x7b   : > { %474 = vmatpush1.msra.mxu0 %v393_v34  ;;  %1141 = vmatpush3.msra.mxu1 %v401_v46  ;;  %v600_v18 = vld [vmem:[#allocation10 + $0x50] sm:$0xff]  ;;  %v622_v19 = vld [vmem:[#allocation10 + $0x100] sm:$0xff]  ;;  %v599_v20 = vld [vmem:[#allocation10 + $0x48] sm:$0xff] }
  0x7c   : > { %475 = vmatprep.subr.mxu0 %v391_v36  ;;  %1142 = vmatprep.subr.mxu1 %v1558_v5  ;;  %v597_v21 = vld [vmem:[#allocation10 + $0x38] sm:$0xff]  ;;  %v619_v22 = vld [vmem:[#allocation10 + $0xe8] sm:$0xff]  ;;  %v596_v23 = vld [vmem:[#allocation10 + $0x30] sm:$0xff] }
  0x7d   : > { %476 = vmatpush1.msra.mxu0 %v390_v37  ;;  %1143 = vmatpush3.msra.mxu1 %v398_v50  ;;  %v594_v24 = vld [vmem:[#allocation10 + $0x20] sm:$0xff]  ;;  %v616_v25 = vld [vmem:[#allocation10 + $0xd0] sm:$0xff]  ;;  %v593_v26 = vld [vmem:[#allocation10 + $0x18] sm:$0xff] }
  0x7e   : > { %477 = vmatprep.subr.mxu0 %v388_v39  ;;  %1144 = vmatprep.subr.mxu1 %v1558_v5  ;;  %v591_v27 = vld [vmem:[#allocation10 + $0x8] sm:$0xff]  ;;  %v613_v28 = vld [vmem:[#allocation10 + $0xb8] sm:$0xff]  ;;  %v590_v29 = vld [vmem:[#allocation10] sm:$0xff] }
  0x7f   : > { %478 = vmatpush1.msra.mxu0 %v387_v41  ;;  %1145 = vmatpush3.msra.mxu1 %v395_v53  ;;  %v1789_v30 = vld [vmem:[#allocation2] sm:$0x1]  ;;  %v610_v31 = vld [vmem:[#allocation10 + $0xa0] sm:$0xff]  ;;  %v604_v33 = vld [vmem:[#allocation10 + $0x70] sm:$0xff] }
  0x80   : > { %479 = vmatprep.subr.mxu0 %v385_v43  ;;  %1146 = vmatprep.subr.mxu1 %v1558_v5  ;;  %v607_v32 = vld [vmem:[#allocation10 + $0x88] sm:$0xff]  ;;  %v601_v34 = vld [vmem:[#allocation10 + $0x58] sm:$0xff]  ;;  %v598_v35 = vld [vmem:[#allocation10 + $0x40] sm:$0xff] }
  0x81   : > { %480 = vmatpush1.msra.mxu0 %v384_v44  ;;  %1147 = vmatpush3.msra.mxu1 %v392_v56  ;;  %v595_v36 = vld [vmem:[#allocation10 + $0x28] sm:$0xff]  ;;  %v592_v37 = vld [vmem:[#allocation10 + $0x10] sm:$0xff]  ;;  %v833_v38 = vld [vmem:[#allocation11 + $0x78] sm:$0xff]  ;;  %v434_v56 = vlaneseq }
  0x82   : > { %514 = vmatmul.mubr.f32.vlgmr.msra.gmra.mxu0 %v382_v45  ;;  %655 = vmatprep.subr.mxu0 %v636_v47  ;;  %v832_v39 = vld [vmem:[#allocation11 + $0x70] sm:$0xff]  ;;  %v831_v40 = vld [vmem:[#allocation11 + $0x68] sm:$0xff]  ;;  %v830_v41 = vld [vmem:[#allocation11 + $0x60] sm:$0xff] }
  0x83   : > { %656 = vmatpush1.msra.mxu0 %v635_v48  ;;  %1148 = vmatprep.subr.mxu1 %v1558_v5  ;;  %v829_v42 = vld [vmem:[#allocation11 + $0x58] sm:$0xff]  ;;  %v828_v43 = vld [vmem:[#allocation11 + $0x50] sm:$0xff]  ;;  %v827_v44 = vld [vmem:[#allocation11 + $0x48] sm:$0xff] }
  0x84   : > { %657 = vmatprep.subr.mxu0 %v633_v49  ;;  %1149 = vmatpush3.msra.mxu1 %v389_v59  ;;  %v825_v46 = vld [vmem:[#allocation11 + $0x38] sm:$0xff]  ;;  %v824_v47 = vld [vmem:[#allocation11 + $0x30] sm:$0xff]  ;;  %v823_v48 = vld [vmem:[#allocation11 + $0x28] sm:$0xff] }
  0x85   : > { %658 = vmatpush1.msra.mxu0 %v632_v51  ;;  %1150 = vmatprep.subr.mxu1 %v1558_v5  ;;  %v822_v49 = vld [vmem:[#allocation11 + $0x20] sm:$0xff]  ;;  %v821_v50 = vld [vmem:[#allocation11 + $0x18] sm:$0xff]  ;;  %v820_v51 = vld [vmem:[#allocation11 + $0x10] sm:$0xff] }
  0x86   : > { %659 = vmatprep.subr.mxu0 %v630_v52  ;;  %1151 = vmatpush3.msra.mxu1 %v386_v62  ;;  %v819_v52 = vld [vmem:[#allocation11 + $0x8] sm:$0xff]  ;;  %v818_v53 = vld [vmem:[#allocation11] sm:$0xff] }
  0x87   : > { %660 = vmatpush1.msra.mxu0 %v629_v54  ;;  %719 = vmatprep.mubr.f32.mxu0 %v1558_v5  ;;  %v432_v59 = vld [vmem:[%s1883_s3] sm:$0x7] }
  0x88   : > { %661 = vmatprep.subr.mxu0 %v627_v55  ;;  %1155 = vmatprep.subr.mxu1 %v1558_v5 }
  0x89   : > { %662 = vmatpush1.msra.mxu0 %v626_v57  ;;  %1153 = vmatmul.mubr.f32.vlgmr.msra.gmra.mxu1 %v382_v45  ;;  %v826_v45 = vld [vmem:[#allocation11 + $0x40] sm:$0xff]  ;;  %v435_v57 = vshrl.u32 %v434_v56, 7 }
  0x8a   : > { %663 = vmatprep.subr.mxu0 %v624_v58  ;;  %1156 = vmatpush3.msra.mxu1 %v637_v3 }
  0x8b   : > { %664 = vmatpush1.msra.mxu0 %v623_v60  ;;  %1157 = vmatprep.subr.mxu1 %v1558_v5  ;;  %v436_v58 = vsub.s32 0, %v435_v57 }
  0x8c   : > { %665 = vmatprep.subr.mxu0 %v621_v61  ;;  %1158 = vmatpush3.msra.mxu1 %v634_v7  ;;  %v638_v61 = vld [vmem:[%s1885_s5] sm:$0x7] }
  0x8d   : > { %666 = vmatpush1.msra.mxu0 %v620_v63  ;;  %1159 = vmatprep.subr.mxu1 %v1558_v5  ;;  %v437_v62 = vrot.slane %v432_v59, %v436_v58  ;;  %v643_v63 = vrot.slane %v638_v61, %v436_v58 }
  0x8e   : > { %667 = vmatprep.subr.mxu0 %v618_v0  ;;  %1160 = vmatpush3.msra.mxu1 %v631_v10 }
  0x8f   : > { %668 = vmatpush1.msra.mxu0 %v617_v1  ;;  %1161 = vmatprep.subr.mxu1 %v1558_v5  ;;  %v440_v1 = vsub.s32 1, %v435_v57 }
  0x90   : > { %669 = vmatprep.subr.mxu0 %v615_v2  ;;  %1162 = vmatpush3.msra.mxu1 %v628_v13 }
  0x91   : > { %670 = vmatpush1.msra.mxu0 %v614_v4  ;;  %1163 = vmatprep.subr.mxu1 %v1558_v5  ;;  %v647_v4 = vrot.slane %v638_v61, %v440_v1  ;;  %v441_v7 = vrot.slane %v432_v59, %v440_v1 }
  0x92   : > { %671 = vmatprep.subr.mxu0 %v612_v6  ;;  %1164 = vmatpush3.msra.mxu1 %v625_v16 }
  0x93   : > { %672 = vmatpush1.msra.mxu0 %v611_v8  ;;  %1165 = vmatprep.subr.mxu1 %v1558_v5 }
  0x94   : > { %673 = vmatprep.subr.mxu0 %v609_v9  ;;  %1166 = vmatpush3.msra.mxu1 %v622_v19 }
  0x95   : > { %674 = vmatpush1.msra.mxu0 %v608_v11  ;;  %1167 = vmatprep.subr.mxu1 %v1558_v5 }
  0x96   : > { %675 = vmatprep.subr.mxu0 %v606_v12  ;;  %1168 = vmatpush3.msra.mxu1 %v619_v22 }
  0x97   : > { %676 = vmatpush1.msra.mxu0 %v605_v14  ;;  %1169 = vmatprep.subr.mxu1 %v1558_v5 }
  0x98   : > { %677 = vmatprep.subr.mxu0 %v603_v15  ;;  %1170 = vmatpush3.msra.mxu1 %v616_v25 }
  0x99   : > { %678 = vmatpush1.msra.mxu0 %v602_v17  ;;  %1171 = vmatprep.subr.mxu1 %v1558_v5 }
  0x9a   : > { %679 = vmatprep.subr.mxu0 %v600_v18  ;;  %1172 = vmatpush3.msra.mxu1 %v613_v28  ;;  %v444_v18 = vsub.s32 2, %v435_v57 }
  0x9b   : > { %680 = vmatpush1.msra.mxu0 %v599_v20  ;;  %1173 = vmatprep.subr.mxu1 %v1558_v5 }
  0x9c   : > { %681 = vmatprep.subr.mxu0 %v597_v21  ;;  %1174 = vmatpush3.msra.mxu1 %v610_v31  ;;  %v651_v19 = vrot.slane %v638_v61, %v444_v18  ;;  %v445_v21 = vrot.slane %v432_v59, %v444_v18 }
  0x9d   : > { %682 = vmatpush1.msra.mxu0 %v596_v23  ;;  %1175 = vmatprep.subr.mxu1 %v1558_v5 }
  0x9e   : > { %683 = vmatprep.subr.mxu0 %v594_v24  ;;  %1187 = vmatprep.mubr.msk.f32.mxu1 %vm1559_vm0, %v1558_v5 }
  0x9f   : > { %684 = vmatpush1.msra.mxu0 %v593_v26  ;;  %1176 = vmatpush3.msra.mxu1 %v607_v32 }
  0xa0   : > { %685 = vmatprep.subr.mxu0 %v591_v27  ;;  %1177 = vmatprep.subr.mxu1 %v1558_v5 }
  0xa1   : > { %686 = vmatpush1.msra.mxu0 %v590_v29  ;;  %1178 = vmatpush3.msra.mxu1 %v604_v33 }
  0xa2   : > { %720 = vmatmul.mubr.f32.vlgmr.msra.gmra.mxu0 %v1789_v30  ;;  %1190 = vmatprep.subr.mxu0 %v1558_v5 }
  0xa3   : > { %1222 = vmatprep.mubr.msk.f32.mxu0 %vm1559_vm0, %v1558_v5  ;;  %1179 = vmatprep.subr.mxu1 %v1558_v5 }
  0xa4   : > { %1180 = vmatpush3.msra.mxu1 %v601_v34  ;;  %1191 = vmatpush3.msra.mxu0 %v833_v38 }
  0xa5   : > { %1181 = vmatprep.subr.mxu1 %v1558_v5  ;;  %1192 = vmatprep.subr.mxu0 %v1558_v5 }
  0xa6   : > { %1182 = vmatpush3.msra.mxu1 %v598_v35  ;;  %1193 = vmatpush3.msra.mxu0 %v832_v39  ;;  %v906_v35 = vand.u32 127, %v434_v56 }
  0xa7   : > { %1183 = vmatprep.subr.mxu1 %v1558_v5  ;;  %1194 = vmatprep.subr.mxu0 %v1558_v5 }
  0xa8   : > { %1184 = vmatpush3.msra.mxu1 %v595_v36  ;;  %1195 = vmatpush3.msra.mxu0 %v831_v40  ;;  %v834_v36 = vld [vmem:[%s1888_s8] sm:$0x1]  ;;  %vm907_vm1 = vcmp.lt.s32.totalorder %v906_v35, 16 }
  0xa9   : > { %1185 = vmatprep.subr.mxu1 %v1558_v5  ;;  %1196 = vmatprep.subr.mxu0 %v1558_v5 }
  0xaa   : > { %1186 = vmatpush3.msra.mxu1 %v592_v37  ;;  %1197 = vmatpush3.msra.mxu0 %v830_v41 }
  0xab   : > { %1188 = vmatmul.mubr.f32.vlgmr.msra.gmra.mxu1 %v1789_v30  ;;  %1198 = vmatprep.subr.mxu0 %v1558_v5 }
  0xac   : > { %1199 = vmatpush3.msra.mxu0 %v829_v42 }
  0xad   : > { %1200 = vmatprep.subr.mxu0 %v1558_v5 }
  0xae   : > { %1201 = vmatpush3.msra.mxu0 %v828_v43 }
  0xaf   : > { %1202 = vmatprep.subr.mxu0 %v1558_v5 }
  0xb0   : > { %1203 = vmatpush3.msra.mxu0 %v827_v44 }
  0xb1   : > { %1204 = vmatprep.subr.mxu0 %v1558_v5 }
  0xb2   : > { %1205 = vmatpush3.msra.mxu0 %v826_v45 }
  0xb3   : > { %1206 = vmatprep.subr.mxu0 %v1558_v5 }
  0xb4   : > { %1207 = vmatpush3.msra.mxu0 %v825_v46 }
  0xb5   : > { %1208 = vmatprep.subr.mxu0 %v1558_v5 }
  0xb6   : > { %1209 = vmatpush3.msra.mxu0 %v824_v47 }
  0xb7   : > { %1210 = vmatprep.subr.mxu0 %v1558_v5 }
  0xb8   : > { %1211 = vmatpush3.msra.mxu0 %v823_v48 }
  0xb9   : > { %1212 = vmatprep.subr.mxu0 %v1558_v5 }
  0xba   : > { %1213 = vmatpush3.msra.mxu0 %v822_v49 }
  0xbb   : > { %1214 = vmatprep.subr.mxu0 %v1558_v5 }
  0xbc   : > { %1215 = vmatpush3.msra.mxu0 %v821_v50 }
  0xbd   : > { %1216 = vmatprep.subr.mxu0 %v1558_v5 }
  0xbe   : > { %1217 = vmatpush3.msra.mxu0 %v820_v51 }
  0xbf   : > { %1218 = vmatprep.subr.mxu0 %v1558_v5 }
  0xc0   : > { %1219 = vmatpush3.msra.mxu0 %v819_v52 }
  0xc1   : > { %1220 = vmatprep.subr.mxu0 %v1558_v5 }
  0xc2   : > { %1221 = vmatpush3.msra.mxu0 %v818_v53 }
 0x142   : > { %v515_v60 = vpop.f32.mrf.mxu0 }
 0x143   : > { %v516_v2 = vadd.f32 %v515_v60, %v437_v62 }
 0x144   : > { %v517_v0 = vpop.f32.mrf.mxu0 }
 0x145   : > { %v518_v11 = vadd.f32 %v517_v0, %v441_v7 }
 0x149   : > { %v586_v54 = vpop.f32.mrf.mxu1 }
 0x14a   : > { %v587_v25 = vadd.f32 %v586_v54, %v445_v21 }
 0x14b   : > { %v1154_v55 = vpop.f32.mrf.mxu1 }
 0x162   : > { %v721_v5 = vpop.f32.mrf.mxu0 }
 0x163   : > { %v722_v3 = vadd.f32 %v721_v5, %v643_v63 }
 0x164   : > { %v723_v6 = vpop.f32.mrf.mxu0 }
 0x165   : > { %v796_v8 = vadd.f32 %v722_v3, %v516_v2  ;;  %v724_v10 = vadd.f32 %v723_v6, %v647_v4 }
 0x167   : > { %v1061_v9 = vmul.f32 -1.442695, %v796_v8  ;;  %v803_v12 = vadd.f32 %v724_v10, %v518_v11 }
 0x169   : > { %1319 = vpow2.f32 %v1061_v9  ;;  %v1062_v13 = vmul.f32 -1.442695, %v803_v12 }
 0x16b   : > { %v792_v14 = vpop.f32.mrf.mxu1  ;;  %1321 = vpow2.f32 %v1062_v13 }
 0x16c   : > { %v793_v23 = vadd.f32 %v792_v14, %v651_v19 }
 0x16d   : > { %v1189_v15 = vpop.f32.mrf.mxu1 }
 0x176   : > { %v1320_v16 = vpop.eup %1319 }
 0x177   : > { %v800_v17 = vadd.f32 1.0, %v1320_v16 }
 0x178   : > { %v1322_v20 = vpop.eup %1321 }
 0x179   : > { %1323 = vrcp.f32 %v800_v17  ;;  %v807_v22 = vadd.f32 1.0, %v1322_v20 }
 0x17b   : > { %1325 = vrcp.f32 %v807_v22 }
 0x186   : > { %v1324_v24 = vpop.eup %1323 }
 0x187   : > { %v810_v26 = vmul.f32 %v1324_v24, %v793_v23 }
 0x188   : > { %v1326_v28 = vpop.eup %1325 }
 0x189   : > { %v811_v27 = vadd.f32 %v810_v26, %v587_v25  ;;  %v813_v29 = vsub.f32 1.0, %v1326_v28  ;;  %v815_v33 = vmul.f32 %v1326_v28, %v1789_v30 }
 0x18b   : > { %1327 = vtanh.f32 %v811_v27 }
 0x198   : > { %v1328_v31 = vpop.eup %1327 }
 0x199   : > { %v814_v32 = vmul.f32 %v1328_v31, %v813_v29 }
 0x19b   : > { %v816_v34 = vadd.f32 %v815_v33, %v814_v32 }
 0x19d   : > { %817 = vst [vmem:[#allocation2] sm:$0x1] %v816_v34  ;;  %1223 = vmatmul.mubr.f32.vlgmr.msra.gmra.mxu0 %v816_v34 }
 0x25d   : > { %v901_v37 = vpop.f32.mrf.mxu0 }
 0x25e   : > { %v902_v38 = vadd.f32 %v901_v37, %v834_v36 }
 0x25f   : > { %v1224_v39 = vpop.f32.mrf.mxu0 }
 0x260   : > { %v908_v40 = vsel %vm907_vm1, %v902_v38, -1e+30 }
 0x261   : > { %v910_v41 = vsel %vm909_vm2, %v908_v40, -inf }
 0x262   : > { %911 = vmax.xlane.f32.xlu0 %v910_v41 }
 0x2eb   : > { %v912_v42 = vpop.xlane.xlu0 %911 }
 0x2ec   : > { %v913_v43 = vsub.f32 %v908_v40, %v912_v42 }
 0x2ee   : > { %v914_v30 = vmul.f32 1.442695, %v913_v43 }
 0x2f0   : > { %1329 = vpow2.f32 %v914_v30 }
 0x2fd   : > { %v1330_v44 = vpop.eup %1329 }
 0x2fe   : > { %v916_v45 = vsel %vm907_vm1, %v1330_v44, 0.0 }
 0x2ff   : > { %v917_v46 = vsel %vm909_vm2, %v916_v45, 0.0 }
 0x300   : > { %918 = vadd.xlane.f32.xlu0 %v917_v46 }
 0x389   : > { %v919_v47 = vpop.xlane.xlu0 %918 }
 0x38a   : > { %1331 = vlog2.f32 %v919_v47 }
 0x397   : > { %v1332_v48 = vpop.eup %1331 }
 0x398   : > { %v921_v49 = vmul.f32 0.6931472, %v1332_v48  ;;  %927 = sbr.rel (%p1063_p1) target bundleno = 926 (0x39e), region = 76 }
 0x39a   : > { %v922_v50 = vsub.f32 %v913_v43, %v921_v49 }
 0x39c   : > { %923 = vst [vmem:[%s1747_s30] sm:$0x1] %v922_v50 }
 0x39d   : > { %928 = vst [vmem:[#allocation14] sm:$0x1] %v816_v34 }
 0x39e PF: > { %s1064_s15 = sshll.u32 %s1641_s0, 4  ;;  %s942_s12 = sshll.u32 %s1747_s30, 4  ;;  %s943_s12 = int_to_ptr.vmem [resolvable:$true] %s942_s12 }
 0x39f   : > { %s940_s22 = scalar_lea.hbm %s1889_s9, %s1064_s15  ;;  %s930_s29 = scalar_lea.sflag [#allocation7], %s369_s27 }
 0x3a0   : > { %s1445_s14 = scalar_lea.vmem %s943_s12, 16  ;;  %s1560_s20 = smov [#allocation13]  }
 0x3a1   : > { %p1446_p3 = scmp.ne.s32.totalorder %s943_s12, %s1445_s14  ;;  %s1449_s23 = sshll.u32 %s1560_s20, 4  ;;  %s1450_s23 = int_to_ptr.vmem [resolvable:$false] %s1449_s23 }
 0x3a2   : > { %s1451_s13 = scalar_lea.vmem %s1450_s23, 32  ;;  %p1452_p4 = scmp.lt.s32.totalorder %s943_s12, %s1450_s23 }
 0x3a3   : > { %p1447_p2 = pnand %p1446_p3, %p1660_p5  ;;  %p1453_p9 = scmp.lt.s32.totalorder %s1451_s13, %s1445_s14 }
 0x3a5   : > { %p1448_p7 = pneg %p1447_p2  ;;  %p1454_p0 = por %p1453_p9, %p1452_p4 }
 0x3a7   : > { %p1455_p10 = pnand %p1454_p0, %p1448_p7 }
 0x3a9   : > { %1458 = shalt.err (!%p1455_p10)
}
 0x3aa   : > { %s1459_s28 = scalar_lea.hbm %s940_s22, 16  ;;  %s1463_s15 = scalar_lea.hbm %s1889_s9, 128 }
 0x3ab   : > { %p1460_p8 = scmp.ne.s32.totalorder %s940_s22, %s1459_s28  ;;  %p1464_p11 = scmp.lt.s32.totalorder %s940_s22, %s1889_s9 }
 0x3ac   : > { %p1465_p1 = scmp.lt.s32.totalorder %s1463_s15, %s1459_s28 }
 0x3ad   : > { %p1461_p12 = pnand %p1460_p8, %p1660_p5 }
 0x3ae   : > { %p1466_p3 = por %p1465_p1, %p1464_p11 }
 0x3af   : > { %p1462_p13 = pneg %p1461_p12 }
 0x3b1   : > { %p1467_p2 = pnand %p1466_p3, %p1462_p13 }
 0x3b3   : > { %1470 = shalt.err (!%p1467_p2)
}
 0x3b4   : > { %1241 = dma.vmem_to_hbm [thread:$0]  (%p1660_p5), %s943_s12, 16, %s940_s22, %s930_s29  }
 0x3b5   : > { %s1561_s14 = smov [#allocation14]   ;;  %p1910_p4 = scmp.eq.s32.totalorder %s1641_s0, 7 }
 0x3b6   : > { %s953_s20 = sshll.u32 %s1561_s14, 4  ;;  %s954_s20 = int_to_ptr.vmem [resolvable:$true] %s953_s20 }
 0x3b7   : > { %s1471_s23 = scalar_lea.vmem %s954_s20, 16  ;;  %s1477_s13 = scalar_lea.vmem %s954_s20, 32 }
 0x3b8   : > { %p1472_p7 = scmp.ne.s32.totalorder %s954_s20, %s1471_s23  ;;  %p1478_p10 = scmp.lt.s32.totalorder %s954_s20, %s954_s20 }
 0x3b9   : > { %p1479_p8 = scmp.lt.s32.totalorder %s1477_s13, %s1471_s23 }
 0x3ba   : > { %p1473_p9 = pnand %p1472_p7, %p1910_p4 }
 0x3bb   : > { %p1480_p12 = por %p1479_p8, %p1478_p10 }
 0x3bc   : > { %p1474_p0 = pneg %p1473_p9 }
 0x3be   : > { %p1481_p6 = pnand %p1480_p12, %p1474_p0 }
 0x3c0   : > { %1484 = shalt.err (!%p1481_p6)
}
 0x3c1   : > { %p1911_p13 = pmov %p1910_p4  ;;  %p1912_p5 = pmov %p1910_p4 }
 0x3c3   : > { %1243 = dma.vmem_to_hbm [thread:$0]  (%p1911_p13), %s954_s20, 16, %s1890_s10, [#allocation15]  }
 0x3c4   : > { %1526 = dma.done.wait (%p1912_p5), [#allocation15], 16   ;;  %p1913_p11 = pmov %p1910_p4 }
 0x3c6   : > { %1528 = vsyncadd (%p1913_p11), [#allocation15], 4294967280 }
 0x3c7 PF: > { %p1274_p1 = scmp.ge.s32.totalorder %s1547_s19, 2  ;;  %s969_s22 = sand.u32 1, %s1535_s16  }
 0x3c8   : > { %p1914_p3 = scmp.ne.s32.totalorder %s1897_s26, 0  ;;  %s970_s12 = scalar_lea.sflag [#allocation7], %s969_s22 }
 0x3ca   : > { %p1261_p6 = pnand %p1274_p1, %p1914_p3 }
 0x3cc   : > { %p1262_p2 = pneg %p1261_p6 }
 0x3ce   : > { %1530 = dma.done.wait (%p1262_p2), %s970_s12, 16  }
 0x3cf   : > { %1532 = vsyncadd (%p1262_p2), %s970_s12, 4294967280  ;;  %p29_p7 = scmp.ge.s32.totalorder %s1645_s21, 10   ;;  %s1915_s16 = smov %s1539_s17 }
 0x3d0   : > { %s1916_s17 = smov %s1543_s18  ;;  %s1917_s18 = smov %s1656_s24 }
 0x3d1   : > { %s1918_s19 = smov %s1645_s21  ;;  %31 = sbr.rel (!%p29_p7) target bundleno = 13 (0xd), region = 118 }
 0x3d6   :  { %974 = vsyncpa [#allocation6], 1 }
 0x3d7   :  { %976 = vsyncpa [#allocation6 + $0x1], 1 }
 0x3d8   :  { %977 = vsyncpa [#allocation9], 1 }
 0x3d9   :  { %978 = vsyncpa [#allocation12], 1 }
 0x3da   :  { %979 = vsyncpa [#allocation7], 1 }
 0x3db   :  { %981 = vsyncpa [#allocation7 + $0x1], 1 }
 0x3dc   :  { %982 = vsyncpa [#allocation15], 1 }

</bundles_post_ra>
